<compile_context>
chip_gen: v6e
topology: v6e:2x2x1
jax: 0.10.0
libtpu: 0.0.40
codegen_flags: <defaults>
</compile_context>

<pallas_src>
import functools
import math

import jax
import jax.numpy as jnp
from jax.experimental import pallas as pl
from jax.experimental.pallas import tpu as pltpu


def _round_up(x, m):
    return (x + m - 1) // m * m


def _gelu_tanh(x):
    # tanh-approximate GELU: transcendental goes to the EUP slot.
    c = jnp.float32(0.7978845608028654)  # sqrt(2/pi)
    return 0.5 * x * (1.0 + jnp.tanh(c * (x + jnp.float32(0.044715) * x * x * x)))


def _gelu_exact(x):
    # nn.GELU() default (erf); kept for strict-semantics mode.
    return 0.5 * x * (1.0 + jax.lax.erf(x * jnp.float32(0.7071067811865476)))


def recnet_kernel(x_ref, w1_ref, b1_ref, w2_ref, b2_ref, w3_ref, b3_ref, o_ref,
                  *, approximate_gelu):
    gelu = _gelu_tanh if approximate_gelu else _gelu_exact

    x = x_ref[...]  # (TILE_N, E_pad), bf16 — fed straight to the MXU.

    # dense[0]: Linear(E, 4E) + GELU   (bf16 operands, f32 accumulate)
    h = jnp.dot(x, w1_ref[...], preferred_element_type=jnp.float32)
    h = gelu(h + b1_ref[...])

    # dense[2]: Dropout(0.1) -> identity in eval mode.

    # dense[3]: Linear(4E, E) + GELU
    h = jnp.dot(h.astype(w2_ref.dtype), w2_ref[...],
                preferred_element_type=jnp.float32)
    h = gelu(h + b2_ref[...])

    # head: Linear(E, num_classes)  (output lanes padded to a multiple of 128)
    y = jnp.dot(h.astype(w3_ref.dtype), w3_ref[...],
                preferred_element_type=jnp.float32)
    o_ref[...] = (y + b3_ref[...]).astype(o_ref.dtype)


def _choose_tile_n(n, e_pad, h_pad, c_pad, vmem_budget_bytes):
    """Pick a row-tile size that keeps resident weights + pipelined tiles
    inside a VMEM budget that is safe on v5e/v6e/v7x."""
    # Resident bf16 weights + f32 biases; charge 2x for default double-buffering.
    weight_bytes = 2 * (e_pad * h_pad + h_pad * e_pad + e_pad * c_pad)
    weight_bytes += 4 * (h_pad + e_pad + c_pad)
    weight_bytes *= 2

    tile = 512
    while tile > 8:
        tile_bytes = (
            2 * tile * e_pad * 2      # double-buffered bf16 x tiles
            + 2 * tile * c_pad * 4    # double-buffered f32 out tiles
            + tile * h_pad * 4        # f32 (TILE_N, 4E) GELU intermediate
            + tile * e_pad * 4        # f32 (TILE_N, E) second intermediate
        )
        if weight_bytes + tile_bytes <= vmem_budget_bytes:
            break
        tile //= 2
    # Don't pad a tiny batch up to a huge tile: cap at round_up(N, 8).
    return max(8, min(tile, _round_up(n, 8)))


def recnet_forward(x, params, *, approximate_gelu=True, tile_n=None,
                   vmem_budget_bytes=48 * 1024 * 1024):
    """x: (..., E). Returns (..., num_classes) in float32."""
    w1, b1, w2, b2, w3, b3 = params
    orig_shape = x.shape
    E = orig_shape[-1]
    H = w1.shape[1]
    C = w3.shape[1]

    x2d = x.reshape(-1, E)
    N = x2d.shape[0]

    # Pad contraction / output dims to multiples of 128 (lane-dense, exact
    # with zero padding since GELU(0) = 0 and padded weight rows are zero).
    E_pad = _round_up(E, 128)
    H_pad = _round_up(H, 128)
    C_pad = _round_up(C, 128)

    if tile_n is None:
        tile_n = _choose_tile_n(N, E_pad, H_pad, C_pad, vmem_budget_bytes)
    N_pad = _round_up(max(N, tile_n), tile_n)

    bf16, f32 = jnp.bfloat16, jnp.float32
    xp = jnp.pad(x2d, ((0, N_pad - N), (0, E_pad - E))).astype(bf16)
    w1p = jnp.pad(w1, ((0, E_pad - E), (0, H_pad - H))).astype(bf16)
    b1p = jnp.pad(b1, ((0, 0), (0, H_pad - H))).astype(f32)
    w2p = jnp.pad(w2, ((0, H_pad - H), (0, E_pad - E))).astype(bf16)
    b2p = jnp.pad(b2, ((0, 0), (0, E_pad - E))).astype(f32)
    w3p = jnp.pad(w3, ((0, E_pad - E), (0, C_pad - C))).astype(bf16)
    b3p = jnp.pad(b3, ((0, 0), (0, C_pad - C))).astype(f32)

    kernel = functools.partial(recnet_kernel, approximate_gelu=approximate_gelu)

    out = pl.pallas_call(
        kernel,
        out_shape=jax.ShapeDtypeStruct((N_pad, C_pad), jnp.float32),
        grid_spec=pltpu.PrefetchScalarGridSpec(
            num_scalar_prefetch=0,
            grid=(N_pad // tile_n,),
            in_specs=[
                pl.BlockSpec((tile_n, E_pad), lambda i: (i, 0)),   # x row tile
                pl.BlockSpec((E_pad, H_pad), lambda i: (0, 0)),    # w1 (resident)
                pl.BlockSpec((1, H_pad), lambda i: (0, 0)),        # b1
                pl.BlockSpec((H_pad, E_pad), lambda i: (0, 0)),    # w2 (resident)
                pl.BlockSpec((1, E_pad), lambda i: (0, 0)),        # b2
                pl.BlockSpec((E_pad, C_pad), lambda i: (0, 0)),    # w3 (resident)
                pl.BlockSpec((1, C_pad), lambda i: (0, 0)),        # b3
            ],
            out_specs=pl.BlockSpec((tile_n, C_pad), lambda i: (i, 0)),
        ),
        compiler_params=pltpu.CompilerParams(
            dimension_semantics=("parallel",),          # independent row tiles
            vmem_limit_bytes=64 * 1024 * 1024,          # above scoped defaults
        ),
    )(xp, w1p, b1p, w2p, b2p, w3p, b3p)

    return out[:N, :C].reshape(*orig_shape[:-1], C)


def init_params(key, embed_size, num_classes, dtype=jnp.float32):
    """nn.Linear-style init (uniform +/- 1/sqrt(fan_in)).

    Weights stored as (in_features, out_features); biases as (1, out_features).
    """
    def linear(k, fan_in, fan_out):
        kw, kb = jax.random.split(k)
        bound = 1.0 / math.sqrt(fan_in)
        w = jax.random.uniform(kw, (fan_in, fan_out), dtype, -bound, bound)
        b = jax.random.uniform(kb, (1, fan_out), dtype, -bound, bound)
        return w, b

    k1, k2, k3 = jax.random.split(key, 3)
    w1, b1 = linear(k1, embed_size, embed_size * 4)
    w2, b2 = linear(k2, embed_size * 4, embed_size)
    w3, b3 = linear(k3, embed_size, num_classes)
    return (w1, b1, w2, b2, w3, b3)


def recnet_reference(x, params, *, approximate_gelu=True):
    """Pure-JAX f32 reference for correctness check."""
    w1, b1, w2, b2, w3, b3 = params
    h = jax.nn.gelu(x @ w1 + b1, approximate=approximate_gelu)
    h = jax.nn.gelu(h @ w2 + b2, approximate=approximate_gelu)
    return h @ w3 + b3


if __name__ == "__main__":
    batch, seq, embed_size, num_classes = 2, 8, 32, 4

    key = jax.random.PRNGKey(0)
    k_x, k_p = jax.random.split(key)
    x = jax.random.normal(k_x, (batch, seq, embed_size), dtype=jnp.float32)
    params = init_params(k_p, embed_size, num_classes)

    out = recnet_forward(x, params, approximate_gelu=True)
    out = jax.block_until_ready(out)

    ref = recnet_reference(
        x.reshape(-1, embed_size), params, approximate_gelu=True
    ).reshape(batch, seq, num_classes)

    assert out.shape == (batch, seq, num_classes), out.shape
    # bf16 MXU operands vs f32 reference -> loosened tolerance.
    err = float(jnp.max(jnp.abs(out - ref)))
    assert err < 5e-2, err

    print("KERNEL_OK")
</pallas_src>

<mosaic_0001>
module attributes {stable_mosaic.version = 11 : i64} {
  func.func @recnet_kernel(%arg0: i32, %arg1: memref<16x128xbf16, #tpu.memory_space<vmem>>, %arg2: memref<128x128xbf16, #tpu.memory_space<vmem>>, %arg3: memref<1x128xf32, #tpu.memory_space<vmem>>, %arg4: memref<128x128xbf16, #tpu.memory_space<vmem>>, %arg5: memref<1x128xf32, #tpu.memory_space<vmem>>, %arg6: memref<128x128xbf16, #tpu.memory_space<vmem>>, %arg7: memref<1x128xf32, #tpu.memory_space<vmem>>, %arg8: memref<16x128xf32, #tpu.memory_space<vmem>>) attributes {dimension_semantics = [#tpu.dimension_semantics<parallel>], iteration_bounds = array<i64: 1>, scalar_prefetch = 0 : i64, scratch_operands = 0 : i64, tpu.core_type = #tpu.core_type<tc>, window_params = [{transform_indices = @transform_0, window_bounds = array<i64: 16, 128>}, {pipeline_mode = #tpu.pipeline_mode<synchronous>, transform_indices = @transform_1, window_bounds = array<i64: 128, 128>}, {pipeline_mode = #tpu.pipeline_mode<synchronous>, transform_indices = @transform_2, window_bounds = array<i64: 1, 128>}, {pipeline_mode = #tpu.pipeline_mode<synchronous>, transform_indices = @transform_3, window_bounds = array<i64: 128, 128>}, {pipeline_mode = #tpu.pipeline_mode<synchronous>, transform_indices = @transform_4, window_bounds = array<i64: 1, 128>}, {pipeline_mode = #tpu.pipeline_mode<synchronous>, transform_indices = @transform_5, window_bounds = array<i64: 128, 128>}, {pipeline_mode = #tpu.pipeline_mode<synchronous>, transform_indices = @transform_6, window_bounds = array<i64: 1, 128>}, {transform_indices = @transform_7, window_bounds = array<i64: 16, 128>}]} {
    %c0 = arith.constant 0 : index
    %c0_0 = arith.constant 0 : index
    %0 = vector.load %arg1[%c0, %c0_0] : memref<16x128xbf16, #tpu.memory_space<vmem>>, vector<16x128xbf16>
    %c0_1 = arith.constant 0 : index
    %c0_2 = arith.constant 0 : index
    %1 = vector.load %arg2[%c0_1, %c0_2] : memref<128x128xbf16, #tpu.memory_space<vmem>>, vector<128x128xbf16>
    %cst = arith.constant dense<0.000000e+00> : vector<16x128xf32>
    %2 = tpu.matmul %0, %1, %cst {dimension_numbers = #tpu.dot_dimension_numbers<[1], [0], [0], [1], [0, 0, 1, 1], [], []>} : vector<16x128xbf16>, vector<128x128xbf16>, vector<16x128xf32> -> vector<16x128xf32>
    %c0_3 = arith.constant 0 : index
    %c0_4 = arith.constant 0 : index
    %3 = vector.load %arg3[%c0_3, %c0_4] : memref<1x128xf32, #tpu.memory_space<vmem>>, vector<1x128xf32>
    %4 = vector.broadcast %3 : vector<1x128xf32> to vector<16x128xf32>
    %5 = arith.addf %2, %4 : vector<16x128xf32>
    %cst_5 = arith.constant 5.000000e-01 : f32
    %6 = vector.broadcast %cst_5 : f32 to vector<16x128xf32>
    %7 = arith.mulf %6, %5 : vector<16x128xf32>
    %cst_6 = arith.constant 4.471500e-02 : f32
    %8 = vector.broadcast %cst_6 : f32 to vector<16x128xf32>
    %9 = arith.mulf %8, %5 : vector<16x128xf32>
    %10 = arith.mulf %9, %5 : vector<16x128xf32>
    %11 = arith.mulf %10, %5 : vector<16x128xf32>
    %12 = arith.addf %5, %11 : vector<16x128xf32>
    %cst_7 = arith.constant 0.797884583 : f32
    %13 = vector.broadcast %cst_7 : f32 to vector<16x128xf32>
    %14 = arith.mulf %13, %12 : vector<16x128xf32>
    %15 = math.tanh %14 : vector<16x128xf32>
    %cst_8 = arith.constant 1.000000e+00 : f32
    %16 = vector.broadcast %cst_8 : f32 to vector<16x128xf32>
    %17 = arith.addf %16, %15 : vector<16x128xf32>
    %18 = arith.mulf %7, %17 : vector<16x128xf32>
    %19 = arith.truncf %18 : vector<16x128xf32> to vector<16x128xbf16>
    %c0_9 = arith.constant 0 : index
    %c0_10 = arith.constant 0 : index
    %20 = vector.load %arg4[%c0_9, %c0_10] : memref<128x128xbf16, #tpu.memory_space<vmem>>, vector<128x128xbf16>
    %cst_11 = arith.constant dense<0.000000e+00> : vector<16x128xf32>
    %21 = tpu.matmul %19, %20, %cst_11 {dimension_numbers = #tpu.dot_dimension_numbers<[1], [0], [0], [1], [0, 0, 1, 1], [], []>} : vector<16x128xbf16>, vector<128x128xbf16>, vector<16x128xf32> -> vector<16x128xf32>
    %c0_12 = arith.constant 0 : index
    %c0_13 = arith.constant 0 : index
    %22 = vector.load %arg5[%c0_12, %c0_13] : memref<1x128xf32, #tpu.memory_space<vmem>>, vector<1x128xf32>
    %23 = vector.broadcast %22 : vector<1x128xf32> to vector<16x128xf32>
    %24 = arith.addf %21, %23 : vector<16x128xf32>
    %cst_14 = arith.constant 5.000000e-01 : f32
    %25 = vector.broadcast %cst_14 : f32 to vector<16x128xf32>
    %26 = arith.mulf %25, %24 : vector<16x128xf32>
    %cst_15 = arith.constant 4.471500e-02 : f32
    %27 = vector.broadcast %cst_15 : f32 to vector<16x128xf32>
    %28 = arith.mulf %27, %24 : vector<16x128xf32>
    %29 = arith.mulf %28, %24 : vector<16x128xf32>
    %30 = arith.mulf %29, %24 : vector<16x128xf32>
    %31 = arith.addf %24, %30 : vector<16x128xf32>
    %cst_16 = arith.constant 0.797884583 : f32
    %32 = vector.broadcast %cst_16 : f32 to vector<16x128xf32>
    %33 = arith.mulf %32, %31 : vector<16x128xf32>
    %34 = math.tanh %33 : vector<16x128xf32>
    %cst_17 = arith.constant 1.000000e+00 : f32
    %35 = vector.broadcast %cst_17 : f32 to vector<16x128xf32>
    %36 = arith.addf %35, %34 : vector<16x128xf32>
    %37 = arith.mulf %26, %36 : vector<16x128xf32>
    %38 = arith.truncf %37 : vector<16x128xf32> to vector<16x128xbf16>
    %c0_18 = arith.constant 0 : index
    %c0_19 = arith.constant 0 : index
    %39 = vector.load %arg6[%c0_18, %c0_19] : memref<128x128xbf16, #tpu.memory_space<vmem>>, vector<128x128xbf16>
    %cst_20 = arith.constant dense<0.000000e+00> : vector<16x128xf32>
    %40 = tpu.matmul %38, %39, %cst_20 {dimension_numbers = #tpu.dot_dimension_numbers<[1], [0], [0], [1], [0, 0, 1, 1], [], []>} : vector<16x128xbf16>, vector<128x128xbf16>, vector<16x128xf32> -> vector<16x128xf32>
    %c0_21 = arith.constant 0 : index
    %c0_22 = arith.constant 0 : index
    %41 = vector.load %arg7[%c0_21, %c0_22] : memref<1x128xf32, #tpu.memory_space<vmem>>, vector<1x128xf32>
    %42 = vector.broadcast %41 : vector<1x128xf32> to vector<16x128xf32>
    %43 = arith.addf %40, %42 : vector<16x128xf32>
    %c0_23 = arith.constant 0 : index
    %c0_24 = arith.constant 0 : index
    %44 = vector.load %arg8[%c0_23, %c0_24] : memref<16x128xf32, #tpu.memory_space<vmem>>, vector<16x128xf32>
    tpu.vector_store %arg8[%c0_23, %c0_24], %43 {strides = array<i32>} : memref<16x128xf32, #tpu.memory_space<vmem>>, vector<16x128xf32>,
    return
  }
  func.func @transform_0(%arg0: i32) -> (i32, i32) {
    %c0_i32 = arith.constant 0 : i32
    %c0_i32_0 = arith.constant 0 : i32
    return %arg0, %c0_i32 : i32, i32
  }
  func.func @transform_1(%arg0: i32) -> (i32, i32) {
    %c0_i32 = arith.constant 0 : i32
    %c0_i32_0 = arith.constant 0 : i32
    %c0_i32_1 = arith.constant 0 : i32
    return %c0_i32, %c0_i32_0 : i32, i32
  }
  func.func @transform_2(%arg0: i32) -> (i32, i32) {
    %c0_i32 = arith.constant 0 : i32
    %c0_i32_0 = arith.constant 0 : i32
    %c0_i32_1 = arith.constant 0 : i32
    return %c0_i32, %c0_i32_0 : i32, i32
  }
  func.func @transform_3(%arg0: i32) -> (i32, i32) {
    %c0_i32 = arith.constant 0 : i32
    %c0_i32_0 = arith.constant 0 : i32
    %c0_i32_1 = arith.constant 0 : i32
    return %c0_i32, %c0_i32_0 : i32, i32
  }
  func.func @transform_4(%arg0: i32) -> (i32, i32) {
    %c0_i32 = arith.constant 0 : i32
    %c0_i32_0 = arith.constant 0 : i32
    %c0_i32_1 = arith.constant 0 : i32
    return %c0_i32, %c0_i32_0 : i32, i32
  }
  func.func @transform_5(%arg0: i32) -> (i32, i32) {
    %c0_i32 = arith.constant 0 : i32
    %c0_i32_0 = arith.constant 0 : i32
    %c0_i32_1 = arith.constant 0 : i32
    return %c0_i32, %c0_i32_0 : i32, i32
  }
  func.func @transform_6(%arg0: i32) -> (i32, i32) {
    %c0_i32 = arith.constant 0 : i32
    %c0_i32_0 = arith.constant 0 : i32
    %c0_i32_1 = arith.constant 0 : i32
    return %c0_i32, %c0_i32_0 : i32, i32
  }
  func.func @transform_7(%arg0: i32) -> (i32, i32) {
    %c0_i32 = arith.constant 0 : i32
    %c0_i32_0 = arith.constant 0 : i32
    return %arg0, %c0_i32 : i32, i32
  }
}

</mosaic_0001>

<bundles_post_ra>
// kernel: tpu_custom_call.1
= control target key start
LH: loop header
LB: loop body
LE: loop exit
PB: predicated region body
PF: predicated region fallthrough
CT: control target
= control target key end

     0   :  { %12 = vsyncpa [#allocation3], 0  ;;  %s870_s0 = inlined_call_operand.hbm [shape: bf16[16,128], index: 0, kind: input, shape index: {}]   ;;  %s871_s1 = inlined_call_operand.hbm [shape: bf16[128,128], index: 1, kind: input, shape index: {}]   ;;  %s872_s2 = inlined_call_operand.vmem [shape: f32[1,128], index: 2, kind: input, shape index: {}]   ;;  %s873_s3 = inlined_call_operand.hbm [shape: bf16[128,128], index: 3, kind: input, shape index: {}]   ;;  %s874_s4 = inlined_call_operand.vmem [shape: f32[1,128], index: 4, kind: input, shape index: {}]   ;;  %s875_s5 = inlined_call_operand.hbm [shape: bf16[128,128], index: 5, kind: input, shape index: {}]   ;;  %s876_s6 = inlined_call_operand.vmem [shape: f32[1,128], index: 6, kind: input, shape index: {}]   ;;  %s877_s7 = inlined_call_operand.hbm [shape: f32[16,128], index: 7, kind: output, shape index: {}]  }
   0x1   :  { %13 = vsyncpa [#allocation6], 0 }
   0x2   :  { %14 = vsyncpa [#allocation9], 0 }
   0x3   :  { %15 = vsyncpa [#allocation4], 0  ;;  %s753_s24 = smov [#allocation5]   ;;  %s754_s26 = smov [#allocation2]  }
   0x4   :  { %s33_s25 = sshll.u32 %s753_s24, 4  ;;  %s21_s27 = sshll.u32 %s754_s26, 4  ;;  %s34_s25 = int_to_ptr.vmem [resolvable:$true] %s33_s25  ;;  %s22_s27 = int_to_ptr.vmem [resolvable:$true] %s21_s27 }
   0x5   :  { %s653_s28 = scalar_lea.vmem %s34_s25, 1024  ;;  %p658_p1 = scmp.lt.s32.totalorder %s34_s25, %s34_s25 }
   0x6   :  { %p654_p0 = scmp.ne.s32.totalorder %s34_s25, %s653_s28  ;;  %p659_p2 = scmp.lt.s32.totalorder %s653_s28, %s653_s28 }
   0x8   :  { %p660_p3 = por %p659_p2, %p658_p1 }
   0xa   :  { %p661_p4 = pnand %p660_p3, %p654_p0 }
   0xc   :  { %664 = shalt.err (!%p661_p4)
}
   0xd   :  { %s755_s29 = smov 64   ;;  %s756_s30 = smov 4  }
   0xe   :  { %39 = dma.hbm_to_vmem [thread:$0]  %s871_s1, 1024, %s34_s25, [#allocation6], %s755_s29, %s755_s29, %s756_s30  }
   0xf   :  { %s673_s10 = scalar_lea.vmem %s22_s27, 128  ;;  %p678_p6 = scmp.lt.s32.totalorder %s22_s27, %s22_s27 }
  0x10   :  { %p674_p5 = scmp.ne.s32.totalorder %s22_s27, %s673_s10  ;;  %p679_p7 = scmp.lt.s32.totalorder %s673_s10, %s673_s10 }
  0x12   :  { %p680_p8 = por %p679_p7, %p678_p6 }
  0x14   :  { %p681_p9 = pnand %p680_p8, %p674_p5 }
  0x16   :  { %684 = shalt.err (!%p681_p9)
}
  0x17   :  { %27 = dma.hbm_to_vmem [thread:$0]  %s870_s0, 128, %s22_s27, [#allocation3], %s755_s29, %s755_s29, %s756_s30  }
  0x18   :  { %s757_s13 = smov [#allocation7]   ;;  %s758_s15 = smov [#allocation8]  }
  0x19   :  { %s47_s14 = sshll.u32 %s757_s13, 4  ;;  %s61_s16 = sshll.u32 %s758_s15, 4  ;;  %s48_s14 = int_to_ptr.vmem [resolvable:$true] %s47_s14  ;;  %s62_s16 = int_to_ptr.vmem [resolvable:$true] %s61_s16 }
  0x1a   :  { %s693_s1 = scalar_lea.vmem %s48_s14, 1024  ;;  %p698_p11 = scmp.lt.s32.totalorder %s48_s14, %s48_s14 }
  0x1b   :  { %p694_p10 = scmp.ne.s32.totalorder %s48_s14, %s693_s1  ;;  %p699_p12 = scmp.lt.s32.totalorder %s693_s1, %s693_s1 }
  0x1d   :  { %p700_p13 = por %p699_p12, %p698_p11 }
  0x1f   :  { %p701_p0 = pnand %p700_p13, %p694_p10 }
  0x21   :  { %704 = shalt.err (!%p701_p0)
}
  0x22   :  { %53 = dma.hbm_to_vmem [thread:$0]  %s873_s3, 1024, %s48_s14, [#allocation6], %s755_s29, %s755_s29, %s756_s30  }
  0x23   :  { %s713_s0 = scalar_lea.vmem %s62_s16, 1024  ;;  %p718_p2 = scmp.lt.s32.totalorder %s62_s16, %s62_s16 }
  0x24   :  { %p714_p1 = scmp.ne.s32.totalorder %s62_s16, %s713_s0  ;;  %p719_p3 = scmp.lt.s32.totalorder %s713_s0, %s713_s0 }
  0x26   :  { %p720_p4 = por %p719_p3, %p718_p2 }
  0x28   :  { %p721_p5 = pnand %p720_p4, %p714_p1 }
  0x2a   :  { %724 = shalt.err (!%p721_p5)
}
  0x2b   :  { %67 = dma.hbm_to_vmem [thread:$0]  %s875_s5, 1024, %s62_s16, [#allocation9], %s755_s29, %s755_s29, %s756_s30  }
  0x2c   :  { %745 = dma.done.wait [#allocation3], 128  }
  0x2d   :  { %746 = vsyncadd [#allocation3], 4294967168 }
  0x2e   :  { %747 = dma.done.wait [#allocation6], 2048  }
  0x2f   :  { %748 = vsyncadd [#allocation6], 4294965248 }
  0x30   :  { %749 = dma.done.wait [#allocation9], 1024  }
  0x31   :  { %750 = vsyncadd [#allocation9], 4294966272  ;;  %v759_v0 = vmov 0.0   ;;  %vm760_vm0 = vmmov 0   ;;  %v612_v1 = vld [vmem:[#allocation5 + $0x38] sm:$0xff]   ;;  %v613_v2 = vld [vmem:[#allocation5 + $0x30] sm:$0xff]  }
  0x32   :  { %541 = vmatprep.subr.bf16.mxu0 %v759_v0  ;;  %557 = vmatprep.mubr.msk.bf16.mxu0 %vm760_vm0, %v759_v0  ;;  %v614_v3 = vld [vmem:[#allocation5 + $0x28] sm:$0xff]   ;;  %v615_v4 = vld [vmem:[#allocation5 + $0x20] sm:$0xff]   ;;  %v616_v5 = vld [vmem:[#allocation5 + $0x18] sm:$0xff]   ;;  %s761_s23 = smov [#allocation10]  }
  0x33   :  { %561 = vmatprep.subr.bf16.mxu1 %v759_v0  ;;  %577 = vmatprep.mubr.msk.bf16.mxu1 %vm760_vm0, %v759_v0  ;;  %v617_v6 = vld [vmem:[#allocation5 + $0x10] sm:$0xff]   ;;  %v618_v7 = vld [vmem:[#allocation5 + $0x8] sm:$0xff]   ;;  %v619_v8 = vld [vmem:[#allocation5] sm:$0xff]   ;;  %s472_s24 = sshll.u32 %s761_s23, 4  ;;  %s473_s24 = int_to_ptr.vmem [resolvable:$true] %s472_s24 }
  0x34   :  { %542 = vmatpush3.bf16.msra.mxu0 %v612_v1  ;;  %v620_v9 = vld [vmem:[#allocation2] sm:$0xff]   ;;  %v622_v11 = vld [vmem:[#allocation7 + $0x30] sm:$0xff]   ;;  %v623_v12 = vld [vmem:[#allocation7 + $0x28] sm:$0xff]   ;;  %s725_s25 = scalar_lea.vmem %s473_s24, 256  ;;  %p730_p7 = scmp.lt.s32.totalorder %s473_s24, %s473_s24 }
  0x35   :  { %543 = vmatprep.subr.bf16.mxu0 %v759_v0  ;;  %v621_v10 = vld [vmem:[#allocation7 + $0x38] sm:$0xff]   ;;  %v624_v13 = vld [vmem:[#allocation7 + $0x20] sm:$0xff]   ;;  %v626_v15 = vld [vmem:[#allocation7 + $0x10] sm:$0xff]   ;;  %p726_p6 = scmp.ne.s32.totalorder %s473_s24, %s725_s25  ;;  %p731_p8 = scmp.lt.s32.totalorder %s725_s25, %s725_s25 }
  0x36   :  { %562 = vmatpush3.bf16.msra.mxu1 %v621_v10  ;;  %v625_v14 = vld [vmem:[#allocation7 + $0x18] sm:$0xff]   ;;  %v627_v16 = vld [vmem:[#allocation7 + $0x8] sm:$0xff]   ;;  %v628_v17 = vld [vmem:[#allocation7] sm:$0xff]  }
  0x37   :  { %563 = vmatprep.subr.bf16.mxu1 %v759_v0  ;;  %v486_v18 = vld [vmem:[%s872_s2] ss:$0 sm:$0xff]  ;;  %v630_v45 = vld [vmem:[#allocation8 + $0x30] sm:$0xff]   ;;  %v631_v46 = vld [vmem:[#allocation8 + $0x28] sm:$0xff]   ;;  %p732_p9 = por %p731_p8, %p730_p7 }
  0x38   :  { %544 = vmatpush3.bf16.msra.mxu0 %v613_v2  ;;  %v629_v44 = vld [vmem:[#allocation8 + $0x38] sm:$0xff]   ;;  %v632_v47 = vld [vmem:[#allocation8 + $0x20] sm:$0xff]   ;;  %v634_v49 = vld [vmem:[#allocation8 + $0x10] sm:$0xff]  }
  0x39   :  { %545 = vmatprep.subr.bf16.mxu0 %v759_v0  ;;  %v633_v48 = vld [vmem:[#allocation8 + $0x18] sm:$0xff]   ;;  %v635_v50 = vld [vmem:[#allocation8 + $0x8] sm:$0xff]   ;;  %v636_v51 = vld [vmem:[#allocation8] sm:$0xff]   ;;  %p733_p10 = pnand %p732_p9, %p726_p6 }
  0x3a   :  { %564 = vmatpush3.bf16.msra.mxu1 %v622_v11  ;;  %v496_v52 = vld [vmem:[%s874_s4] ss:$0 sm:$0xff] }
  0x3b   :  { %565 = vmatprep.subr.bf16.mxu1 %v759_v0 }
  0x3c   :  { %546 = vmatpush3.bf16.msra.mxu0 %v614_v3 }
  0x3d   :  { %547 = vmatprep.subr.bf16.mxu0 %v759_v0 }
  0x3e   :  { %566 = vmatpush3.bf16.msra.mxu1 %v623_v12 }
  0x3f   :  { %567 = vmatprep.subr.bf16.mxu1 %v759_v0 }
  0x40   :  { %548 = vmatpush3.bf16.msra.mxu0 %v615_v4 }
  0x41   :  { %549 = vmatprep.subr.bf16.mxu0 %v759_v0 }
  0x42   :  { %568 = vmatpush3.bf16.msra.mxu1 %v624_v13 }
  0x43   :  { %569 = vmatprep.subr.bf16.mxu1 %v759_v0 }
  0x44   :  { %550 = vmatpush3.bf16.msra.mxu0 %v616_v5 }
  0x45   :  { %551 = vmatprep.subr.bf16.mxu0 %v759_v0 }
  0x46   :  { %570 = vmatpush3.bf16.msra.mxu1 %v625_v14  ;;  %v505_v14 = vld [vmem:[%s876_s6] ss:$0 sm:$0xff] }
  0x47   :  { %571 = vmatprep.subr.bf16.mxu1 %v759_v0 }
  0x48   :  { %552 = vmatpush3.bf16.msra.mxu0 %v617_v6 }
  0x49   :  { %553 = vmatprep.subr.bf16.mxu0 %v759_v0 }
  0x4a   :  { %572 = vmatpush3.bf16.msra.mxu1 %v626_v15 }
  0x4b   :  { %573 = vmatprep.subr.bf16.mxu1 %v759_v0 }
  0x4c   :  { %554 = vmatpush3.bf16.msra.mxu0 %v618_v7 }
  0x4d   :  { %555 = vmatprep.subr.bf16.mxu0 %v759_v0 }
  0x4e   :  { %574 = vmatpush3.bf16.msra.mxu1 %v627_v16 }
  0x4f   :  { %575 = vmatprep.subr.bf16.mxu1 %v759_v0 }
  0x50   :  { %556 = vmatpush3.bf16.msra.mxu0 %v619_v8 }
  0x51   :  { %581 = vmatprep.subr.bf16.mxu0 %v759_v0 }
  0x52   :  { %576 = vmatpush3.bf16.msra.mxu1 %v628_v17 }
  0x53   :  { %558 = vmatmul.mubr.bf16.vlgmr.msra.gmra.mxu0 %v620_v9 }
  0x54   :  { %597 = vmatprep.mubr.msk.bf16.mxu0 %vm760_vm0, %v759_v0  ;;  %582 = vmatpush3.bf16.msra.mxu0 %v629_v44 }
  0x55   :  { %583 = vmatprep.subr.bf16.mxu0 %v759_v0 }
  0x58   :  { %584 = vmatpush3.bf16.msra.mxu0 %v630_v45 }
  0x59   :  { %585 = vmatprep.subr.bf16.mxu0 %v759_v0 }
  0x5c   :  { %586 = vmatpush3.bf16.msra.mxu0 %v631_v46 }
  0x5d   :  { %587 = vmatprep.subr.bf16.mxu0 %v759_v0 }
  0x60   :  { %588 = vmatpush3.bf16.msra.mxu0 %v632_v47 }
  0x61   :  { %589 = vmatprep.subr.bf16.mxu0 %v759_v0 }
  0x64   :  { %590 = vmatpush3.bf16.msra.mxu0 %v633_v48 }
  0x65   :  { %591 = vmatprep.subr.bf16.mxu0 %v759_v0 }
  0x68   :  { %592 = vmatpush3.bf16.msra.mxu0 %v634_v49 }
  0x69   :  { %593 = vmatprep.subr.bf16.mxu0 %v759_v0 }
  0x6c   :  { %594 = vmatpush3.bf16.msra.mxu0 %v635_v50 }
  0x6d   :  { %595 = vmatprep.subr.bf16.mxu0 %v759_v0 }
  0x70   :  { %596 = vmatpush3.bf16.msra.mxu0 %v636_v51 }
 0x113   :  { %v196_v19 = vpop.f32.mrf.mxu0 }
 0x114   :  { %v197_v20 = vadd.f32 %v486_v18, %v196_v19 }
 0x115   :  { %v559_v21 = vpop.f32.mrf.mxu0 }
 0x116   :  { %v205_v22 = vmul.f32 0.044715, %v197_v20  ;;  %v203_v38 = vmul.f32 0.5, %v197_v20 }
 0x117   :  { %v199_v23 = vpop.f32.mrf.mxu0 }
 0x118   :  { %v207_v24 = vmul.f32 %v205_v22, %v197_v20  ;;  %v200_v25 = vadd.f32 %v486_v18, %v199_v23 }
 0x119   :  { %v560_v26 = vpop.f32.mrf.mxu0 }
 0x11a   :  { %v209_v27 = vmul.f32 %v207_v24, %v197_v20  ;;  %v206_v28 = vmul.f32 0.044715, %v200_v25  ;;  %v204_v39 = vmul.f32 0.5, %v200_v25 }
 0x11c   :  { %v208_v29 = vmul.f32 %v206_v28, %v200_v25  ;;  %v211_v30 = vadd.f32 %v209_v27, %v197_v20 }
 0x11e   :  { %v210_v31 = vmul.f32 %v208_v29, %v200_v25  ;;  %v213_v32 = vmul.f32 0.7978846, %v211_v30 }
 0x120   :  { %v212_v33 = vadd.f32 %v210_v31, %v200_v25  ;;  %637 = vtanh.f32 %v213_v32 }
 0x122   :  { %v214_v34 = vmul.f32 0.7978846, %v212_v33 }
 0x124   :  { %639 = vtanh.f32 %v214_v34 }
 0x12d   :  { %v638_v35 = vpop.eup %637 }
 0x12e   :  { %v217_v36 = vadd.f32 1.0, %v638_v35 }
 0x130   :  { %v219_v41 = vmul.f32 %v217_v36, %v203_v38 }
 0x131   :  { %v640_v37 = vpop.eup %639 }
 0x132   :  { %v218_v40 = vadd.f32 1.0, %v640_v37 }
 0x134   :  { %v220_v42 = vmul.f32 %v218_v40, %v204_v39 }
 0x136   :  { %v221_v43 = vpack.c.bf16 %v220_v42, %v219_v41 }
 0x138   :  { %578 = vmatmul.mubr.bf16.vlgmr.msra.gmra.mxu1 %v221_v43 }
 0x1f8   :  { %v327_v53 = vpop.f32.mrf.mxu1 }
 0x1f9   :  { %v328_v54 = vadd.f32 %v496_v52, %v327_v53 }
 0x1fa   :  { %v579_v55 = vpop.f32.mrf.mxu1 }
 0x1fb   :  { %v336_v56 = vmul.f32 0.044715, %v328_v54  ;;  %v334_v8 = vmul.f32 0.5, %v328_v54 }
 0x1fc   :  { %v330_v57 = vpop.f32.mrf.mxu1 }
 0x1fd   :  { %v338_v58 = vmul.f32 %v336_v56, %v328_v54  ;;  %v331_v59 = vadd.f32 %v496_v52, %v330_v57 }
 0x1fe   :  { %v580_v60 = vpop.f32.mrf.mxu1 }
 0x1ff   :  { %v340_v61 = vmul.f32 %v338_v58, %v328_v54  ;;  %v337_v62 = vmul.f32 0.044715, %v331_v59  ;;  %v335_v9 = vmul.f32 0.5, %v331_v59 }
 0x201   :  { %v342_v63 = vadd.f32 %v340_v61, %v328_v54  ;;  %v339_v1 = vmul.f32 %v337_v62, %v331_v59 }
 0x203   :  { %v344_v2 = vmul.f32 0.7978846, %v342_v63  ;;  %v341_v3 = vmul.f32 %v339_v1, %v331_v59 }
 0x205   :  { %641 = vtanh.f32 %v344_v2  ;;  %v343_v0 = vadd.f32 %v341_v3, %v331_v59 }
 0x207   :  { %v345_v4 = vmul.f32 0.7978846, %v343_v0 }
 0x209   :  { %643 = vtanh.f32 %v345_v4 }
 0x212   :  { %v642_v5 = vpop.eup %641 }
 0x213   :  { %v348_v6 = vadd.f32 1.0, %v642_v5 }
 0x215   :  { %v350_v11 = vmul.f32 %v348_v6, %v334_v8 }
 0x216   :  { %v644_v7 = vpop.eup %643 }
 0x217   :  { %v349_v10 = vadd.f32 1.0, %v644_v7 }
 0x219   :  { %v351_v12 = vmul.f32 %v349_v10, %v335_v9 }
 0x21b   :  { %v352_v13 = vpack.c.bf16 %v351_v12, %v350_v11 }
 0x21d   :  { %598 = vmatmul.mubr.bf16.vlgmr.msra.gmra.mxu0 %v352_v13 }
 0x2dd   :  { %v458_v15 = vpop.f32.mrf.mxu0 }
 0x2de   :  { %v459_v16 = vadd.f32 %v505_v14, %v458_v15 }
 0x2df   :  { %v599_v17 = vpop.f32.mrf.mxu0 }
 0x2e0   :  { %465 = vst [vmem:[#allocation10] sm:$0xff] %v459_v16 }
 0x2e1   :  { %v461_v18 = vpop.f32.mrf.mxu0 }
 0x2e2   :  { %v462_v19 = vadd.f32 %v505_v14, %v461_v18 }
 0x2e3   :  { %v600_v20 = vpop.f32.mrf.mxu0 }
 0x2e4   :  { %466 = vst [vmem:[#allocation10 + $0x8] sm:$0xff] %v462_v19 }
 0x2e5   :  { %736 = shalt.err (!%p733_p10)
}
 0x2e6   :  { %s762_s26 = smov 128   ;;  %s763_s6 = smov 8  }
 0x2e7   :  { %478 = dma.vmem_to_hbm [thread:$0]  %s473_s24, 256, %s877_s7, [#allocation4], %s762_s26, %s762_s26, %s763_s6  }
 0x2e8   :  { %751 = dma.done.wait [#allocation4], 256  }
 0x2e9   :  { %752 = vsyncadd [#allocation4], 4294967040 }
 0x2ea   :  { %482 = vsyncpa [#allocation3], 1 }
 0x2eb   :  { %483 = vsyncpa [#allocation6], 1 }
 0x2ec   :  { %484 = vsyncpa [#allocation9], 1 }
 0x2ed   :  { %485 = vsyncpa [#allocation4], 1 }

</bundles_post_ra>
